<compile_context>
chip_gen: v7x
topology: tpu7x:2x2x1
jax: 0.10.0
libtpu: 0.0.40
codegen_flags: <defaults>
</compile_context>

<pallas_src>
import jax
import jax.numpy as jnp
from jax import lax
from jax.experimental import pallas as pl
from jax.experimental.pallas import tpu as pltpu


def _round_up(x, m):
    return (x + m - 1) // m * m


def _make_kernel(TB, S, D):
    """Builds the kernel for a fixed (batch-tile, seq-len, embed-dim)."""

    def kernel(ids_ref, table_ref, w_ref, b_ref, out_ref, doc_ref):
        # ids_ref:   (B_pad*S,)  int32 token ids in SMEM (scalar prefetch)
        # table_ref: (V, D)      f32   embedding table, VMEM-resident
        # w_ref:     (D, L_pad)  f32   classifier weight (transposed, padded)
        # b_ref:     (1, L_pad)  f32   classifier bias (padded)
        # out_ref:   (TB, L_pad) f32   logits for this batch block
        # doc_ref:   (TB, D)     f32   VMEM scratch: thresholded doc embeddings
        blk = pl.program_id(0)
        base = blk * (TB * S)

        def row_body(r, carry):
            # Sequential sum over the sequence (same reduction structure as
            # word_embeddings.sum(dim=1) in the reference).
            def tok_body(s, acc):
                tok = ids_ref[base + r * S + s]
                return acc + table_ref[pl.ds(tok, 1), :]

            acc = lax.fori_loop(
                0, S, tok_body,
                jnp.zeros((1, D), jnp.float32),
                unroll=bool(S <= 16),
            )
            # Strict > 0 threshold, then park the row for the block matmul.
            doc_ref[pl.ds(r, 1), :] = (acc > 0.0).astype(jnp.float32)
            return carry

        lax.fori_loop(0, TB, row_body, 0)

        # One sublane/lane-dense MXU matmul + bias per batch block.
        out_ref[...] = (
            jnp.dot(doc_ref[...], w_ref[...], preferred_element_type=jnp.float32)
            + b_ref[...]
        )

    return kernel


def linear_bow_forward(x, emb_table, weight, bias):
    """
    x:         (B, S) int32 token ids
    emb_table: (V, D) float32 embedding table
    weight:    (L, D) float32 (PyTorch nn.Linear layout)
    bias:      (L,)   float32
    returns:   (B, L) float32 logits
    """
    B, S = x.shape
    V, D = emb_table.shape
    L = weight.shape[0]

    LANE = 128
    L_pad = _round_up(L, LANE)

    # Batch tiling: at least 8 rows (sublane-dense stores), at most 128 rows
    # per block (MXU-height-sized epilogue matmul).
    TB = 128 if B > 128 else _round_up(B, 8)
    B_pad = _round_up(B, TB)
    num_blocks = B_pad // TB

    # Lane-dense, zero-padded classifier params (padded columns give 0 logits
    # and are sliced off below).
    w_t = jnp.zeros((D, L_pad), jnp.float32).at[:, :L].set(
        weight.T.astype(jnp.float32)
    )
    b_pad = jnp.zeros((1, L_pad), jnp.float32).at[:, :L].set(
        bias.astype(jnp.float32)[None, :]
    )

    # Flat 1-D ids for SMEM scalar prefetch; padded batch rows use token 0
    # (their logits are discarded).
    ids = (
        jnp.zeros((B_pad, S), jnp.int32).at[:B, :].set(x.astype(jnp.int32)).reshape(-1)
    )

    table_f32 = emb_table.astype(jnp.float32)

    # VMEM budget: resident table + resident classifier params (2x for the
    # pipeline's default double buffering) + double-buffered output blocks +
    # doc scratch + margin.  Cap under v7x's 64 MiB physical VMEM; v5e/v6e
    # (128 MiB) could go higher if a larger vocabulary demanded it.
    needed = (
        2 * V * D * 4
        + 2 * D * L_pad * 4
        + 2 * L_pad * 4
        + 2 * TB * L_pad * 4
        + TB * D * 4
        + (4 << 20)
    )
    vmem_limit = int(max(32 << 20, min(needed, 56 << 20)))

    kernel = _make_kernel(TB, S, D)

    grid_spec = pltpu.PrefetchScalarGridSpec(
        num_scalar_prefetch=1,
        grid=(num_blocks,),
        in_specs=[
            # Embedding table, classifier weight and bias are grid-invariant
            # (constant index_map) -> fetched once, VMEM-resident.
            pl.BlockSpec((V, D), lambda i, ids_s: (0, 0)),
            pl.BlockSpec((D, L_pad), lambda i, ids_s: (0, 0)),
            pl.BlockSpec((1, L_pad), lambda i, ids_s: (0, 0)),
        ],
        out_specs=pl.BlockSpec((TB, L_pad), lambda i, ids_s: (i, 0)),
        scratch_shapes=[pltpu.VMEM((TB, D), jnp.float32)],
    )

    out_padded = pl.pallas_call(
        kernel,
        out_shape=jax.ShapeDtypeStruct((B_pad, L_pad), jnp.float32),
        grid_spec=grid_spec,
        compiler_params=pltpu.CompilerParams(
            dimension_semantics=("parallel",),  # batch blocks shard across v7x TCs
            vmem_limit_bytes=vmem_limit,
        ),
    )(ids, table_f32, w_t, b_pad)

    return out_padded[:B, :L]


if __name__ == "__main__":
    key = jax.random.PRNGKey(0)
    k_emb, k_x, k_w, k_b = jax.random.split(key, 4)

    # Small shapes consistent with the module's forward.
    batch, seq_len = 2, 8
    vocab_size, embed_dim = 32, 32
    num_labels = 4

    emb_table = jax.random.normal(k_emb, (vocab_size, embed_dim), dtype=jnp.float32)
    x = jax.random.randint(k_x, (batch, seq_len), 0, vocab_size, dtype=jnp.int32)
    m = jnp.ones((batch, seq_len), dtype=jnp.float32)  # mask (unused by this model)

    # Deterministic nn.Linear-style parameters.
    weight = jax.random.normal(k_w, (num_labels, embed_dim), dtype=jnp.float32) * 0.1
    bias = jax.random.normal(k_b, (num_labels,), dtype=jnp.float32) * 0.1

    logits = linear_bow_forward(x, emb_table, weight, bias)
    logits = jax.block_until_ready(logits)

    # Reference check in plain JAX (same semantics as the PyTorch forward).
    word_emb = emb_table[x]                               # (B, S, D)
    doc = (word_emb.sum(axis=1) > 0).astype(jnp.float32)  # (B, D)
    ref = doc @ weight.T + bias                           # (B, L)
    assert jnp.allclose(logits, ref, atol=1e-5, rtol=1e-5), "mismatch vs reference"

    print("KERNEL_OK")
</pallas_src>

<mosaic_0001>
module attributes {stable_mosaic.version = 11 : i64} {
  func.func @kernel(%arg0: i32, %arg1: memref<64xi32, #tpu.memory_space<smem>>, %arg2: memref<32x32xf32, #tpu.memory_space<vmem>>, %arg3: memref<32x128xf32, #tpu.memory_space<vmem>>, %arg4: memref<1x128xf32, #tpu.memory_space<vmem>>, %arg5: memref<8x128xf32, #tpu.memory_space<vmem>>, %arg6: memref<8x32xf32, #tpu.memory_space<vmem>>) attributes {dimension_semantics = [#tpu.dimension_semantics<parallel>], iteration_bounds = array<i64: 1>, scalar_prefetch = 1 : i64, scratch_operands = 1 : i64, tpu.core_type = #tpu.core_type<tc>, window_params = [{pipeline_mode = #tpu.pipeline_mode<synchronous>, transform_indices = @transform_0, window_bounds = array<i64: 32, 32>}, {pipeline_mode = #tpu.pipeline_mode<synchronous>, transform_indices = @transform_1, window_bounds = array<i64: 32, 128>}, {pipeline_mode = #tpu.pipeline_mode<synchronous>, transform_indices = @transform_2, window_bounds = array<i64: 1, 128>}, {transform_indices = @transform_3, window_bounds = array<i64: 8, 128>}]} {
    %c64_i32 = arith.constant 64 : i32
    %0 = arith.muli %arg0, %c64_i32 : i32
    %c0_i32 = arith.constant 0 : i32
    %c8_i32 = arith.constant 8 : i32
    %1 = arith.addi %c0_i32, %c8_i32 : i32
    %c1_i32 = arith.constant 1 : i32
    scf.for %arg7 = %c0_i32 to %1 step %c1_i32  : i32 {
      %cst_8 = arith.constant 0.000000e+00 : f32
      %9 = vector.broadcast %cst_8 : f32 to vector<1x32xf32>
      %c0_i32_9 = arith.constant 0 : i32
      %c8_i32_10 = arith.constant 8 : i32
      %10 = arith.muli %arg7, %c8_i32_10 : i32
      %11 = arith.addi %0, %10 : i32
      %12 = arith.addi %11, %c0_i32_9 : i32
      %13 = arith.index_cast %12 : i32 to index
      %14 = memref.load %arg1[%13] : memref<64xi32, #tpu.memory_space<smem>>
      %15 = arith.index_cast %14 : i32 to index
      %c0_11 = arith.constant 0 : index
      %16 = vector.load %arg2[%15, %c0_11] : memref<32x32xf32, #tpu.memory_space<vmem>>, vector<1x32xf32>
      %17 = arith.addf %9, %16 : vector<1x32xf32>
      %c1_i32_12 = arith.constant 1 : i32
      %c8_i32_13 = arith.constant 8 : i32
      %18 = arith.muli %arg7, %c8_i32_13 : i32
      %19 = arith.addi %0, %18 : i32
      %20 = arith.addi %19, %c1_i32_12 : i32
      %21 = arith.index_cast %20 : i32 to index
      %22 = memref.load %arg1[%21] : memref<64xi32, #tpu.memory_space<smem>>
      %23 = arith.index_cast %22 : i32 to index
      %c0_14 = arith.constant 0 : index
      %24 = vector.load %arg2[%23, %c0_14] : memref<32x32xf32, #tpu.memory_space<vmem>>, vector<1x32xf32>
      %25 = arith.addf %17, %24 : vector<1x32xf32>
      %c2_i32 = arith.constant 2 : i32
      %c8_i32_15 = arith.constant 8 : i32
      %26 = arith.muli %arg7, %c8_i32_15 : i32
      %27 = arith.addi %0, %26 : i32
      %28 = arith.addi %27, %c2_i32 : i32
      %29 = arith.index_cast %28 : i32 to index
      %30 = memref.load %arg1[%29] : memref<64xi32, #tpu.memory_space<smem>>
      %31 = arith.index_cast %30 : i32 to index
      %c0_16 = arith.constant 0 : index
      %32 = vector.load %arg2[%31, %c0_16] : memref<32x32xf32, #tpu.memory_space<vmem>>, vector<1x32xf32>
      %33 = arith.addf %25, %32 : vector<1x32xf32>
      %c3_i32 = arith.constant 3 : i32
      %c8_i32_17 = arith.constant 8 : i32
      %34 = arith.muli %arg7, %c8_i32_17 : i32
      %35 = arith.addi %0, %34 : i32
      %36 = arith.addi %35, %c3_i32 : i32
      %37 = arith.index_cast %36 : i32 to index
      %38 = memref.load %arg1[%37] : memref<64xi32, #tpu.memory_space<smem>>
      %39 = arith.index_cast %38 : i32 to index
      %c0_18 = arith.constant 0 : index
      %40 = vector.load %arg2[%39, %c0_18] : memref<32x32xf32, #tpu.memory_space<vmem>>, vector<1x32xf32>
      %41 = arith.addf %33, %40 : vector<1x32xf32>
      %c4_i32 = arith.constant 4 : i32
      %c8_i32_19 = arith.constant 8 : i32
      %42 = arith.muli %arg7, %c8_i32_19 : i32
      %43 = arith.addi %0, %42 : i32
      %44 = arith.addi %43, %c4_i32 : i32
      %45 = arith.index_cast %44 : i32 to index
      %46 = memref.load %arg1[%45] : memref<64xi32, #tpu.memory_space<smem>>
      %47 = arith.index_cast %46 : i32 to index
      %c0_20 = arith.constant 0 : index
      %48 = vector.load %arg2[%47, %c0_20] : memref<32x32xf32, #tpu.memory_space<vmem>>, vector<1x32xf32>
      %49 = arith.addf %41, %48 : vector<1x32xf32>
      %c5_i32 = arith.constant 5 : i32
      %c8_i32_21 = arith.constant 8 : i32
      %50 = arith.muli %arg7, %c8_i32_21 : i32
      %51 = arith.addi %0, %50 : i32
      %52 = arith.addi %51, %c5_i32 : i32
      %53 = arith.index_cast %52 : i32 to index
      %54 = memref.load %arg1[%53] : memref<64xi32, #tpu.memory_space<smem>>
      %55 = arith.index_cast %54 : i32 to index
      %c0_22 = arith.constant 0 : index
      %56 = vector.load %arg2[%55, %c0_22] : memref<32x32xf32, #tpu.memory_space<vmem>>, vector<1x32xf32>
      %57 = arith.addf %49, %56 : vector<1x32xf32>
      %c6_i32 = arith.constant 6 : i32
      %c8_i32_23 = arith.constant 8 : i32
      %58 = arith.muli %arg7, %c8_i32_23 : i32
      %59 = arith.addi %0, %58 : i32
      %60 = arith.addi %59, %c6_i32 : i32
      %61 = arith.index_cast %60 : i32 to index
      %62 = memref.load %arg1[%61] : memref<64xi32, #tpu.memory_space<smem>>
      %63 = arith.index_cast %62 : i32 to index
      %c0_24 = arith.constant 0 : index
      %64 = vector.load %arg2[%63, %c0_24] : memref<32x32xf32, #tpu.memory_space<vmem>>, vector<1x32xf32>
      %65 = arith.addf %57, %64 : vector<1x32xf32>
      %c7_i32 = arith.constant 7 : i32
      %c8_i32_25 = arith.constant 8 : i32
      %66 = arith.muli %arg7, %c8_i32_25 : i32
      %67 = arith.addi %0, %66 : i32
      %68 = arith.addi %67, %c7_i32 : i32
      %69 = arith.index_cast %68 : i32 to index
      %70 = memref.load %arg1[%69] : memref<64xi32, #tpu.memory_space<smem>>
      %71 = arith.index_cast %70 : i32 to index
      %c0_26 = arith.constant 0 : index
      %72 = vector.load %arg2[%71, %c0_26] : memref<32x32xf32, #tpu.memory_space<vmem>>, vector<1x32xf32>
      %73 = arith.addf %65, %72 : vector<1x32xf32>
      %c8_i32_27 = arith.constant 8 : i32
      %cst_28 = arith.constant 0.000000e+00 : f32
      %74 = vector.broadcast %cst_28 : f32 to vector<1x32xf32>
      %75 = arith.cmpf ogt, %73, %74 : vector<1x32xf32>
      %76 = arith.extui %75 : vector<1x32xi1> to vector<1x32xi32>
      %77 = arith.sitofp %76 : vector<1x32xi32> to vector<1x32xf32>
      %78 = arith.index_cast %arg7 : i32 to index
      %c0_29 = arith.constant 0 : index
      %79 = vector.load %arg6[%78, %c0_29] : memref<8x32xf32, #tpu.memory_space<vmem>>, vector<1x32xf32>
      tpu.vector_store %arg6[%78, %c0_29], %77 {strides = array<i32>} : memref<8x32xf32, #tpu.memory_space<vmem>>, vector<1x32xf32>,
    }
    %c8_i32_0 = arith.constant 8 : i32
    %c0 = arith.constant 0 : index
    %c0_1 = arith.constant 0 : index
    %2 = vector.load %arg6[%c0, %c0_1] : memref<8x32xf32, #tpu.memory_space<vmem>>, vector<8x32xf32>
    %c0_2 = arith.constant 0 : index
    %c0_3 = arith.constant 0 : index
    %3 = vector.load %arg3[%c0_2, %c0_3] : memref<32x128xf32, #tpu.memory_space<vmem>>, vector<32x128xf32>
    %cst = arith.constant dense<0.000000e+00> : vector<8x128xf32>
    %4 = tpu.matmul %2, %3, %cst {dimension_numbers = #tpu.dot_dimension_numbers<[1], [0], [0], [1], [0, 0, 1, 1], [], []>} : vector<8x32xf32>, vector<32x128xf32>, vector<8x128xf32> -> vector<8x128xf32>
    %c0_4 = arith.constant 0 : index
    %c0_5 = arith.constant 0 : index
    %5 = vector.load %arg4[%c0_4, %c0_5] : memref<1x128xf32, #tpu.memory_space<vmem>>, vector<1x128xf32>
    %6 = vector.broadcast %5 : vector<1x128xf32> to vector<8x128xf32>
    %7 = arith.addf %4, %6 : vector<8x128xf32>
    %c0_6 = arith.constant 0 : index
    %c0_7 = arith.constant 0 : index
    %8 = vector.load %arg5[%c0_6, %c0_7] : memref<8x128xf32, #tpu.memory_space<vmem>>, vector<8x128xf32>
    tpu.vector_store %arg5[%c0_6, %c0_7], %7 {strides = array<i32>} : memref<8x128xf32, #tpu.memory_space<vmem>>, vector<8x128xf32>,
    return
  }
  func.func @transform_0(%arg0: i32, %arg1: memref<64xi32, #tpu.memory_space<smem>>) -> (i32, i32) {
    %c0_i32 = arith.constant 0 : i32
    %c0_i32_0 = arith.constant 0 : i32
    %c0_i32_1 = arith.constant 0 : i32
    return %c0_i32, %c0_i32_0 : i32, i32
  }
  func.func @transform_1(%arg0: i32, %arg1: memref<64xi32, #tpu.memory_space<smem>>) -> (i32, i32) {
    %c0_i32 = arith.constant 0 : i32
    %c0_i32_0 = arith.constant 0 : i32
    %c0_i32_1 = arith.constant 0 : i32
    return %c0_i32, %c0_i32_0 : i32, i32
  }
  func.func @transform_2(%arg0: i32, %arg1: memref<64xi32, #tpu.memory_space<smem>>) -> (i32, i32) {
    %c0_i32 = arith.constant 0 : i32
    %c0_i32_0 = arith.constant 0 : i32
    %c0_i32_1 = arith.constant 0 : i32
    return %c0_i32, %c0_i32_0 : i32, i32
  }
  func.func @transform_3(%arg0: i32, %arg1: memref<64xi32, #tpu.memory_space<smem>>) -> (i32, i32) {
    %c0_i32 = arith.constant 0 : i32
    %c0_i32_0 = arith.constant 0 : i32
    return %arg0, %c0_i32 : i32, i32
  }
}

</mosaic_0001>

<bundles_post_ra>
// kernel: tpu_custom_call.1
= control target key start
LH: loop header
LB: loop body
LE: loop exit
PB: predicated region body
PF: predicated region fallthrough
CT: control target
= control target key end

     0   :  { %s451_s0 = inlined_call_operand.hbm [shape: s32[64], index: 0, kind: input, shape index: {}]   ;;  %s452_s1 = inlined_call_operand.hbm [shape: f32[32,32], index: 1, kind: input, shape index: {}]   ;;  %s453_s2 = inlined_call_operand.hbm [shape: f32[32,128], index: 2, kind: input, shape index: {}]   ;;  %s454_s3 = inlined_call_operand.vmem [shape: f32[1,128], index: 3, kind: input, shape index: {}]   ;;  %s455_s4 = inlined_call_operand.hbm [shape: f32[8,128], index: 4, kind: output, shape index: {}]  }
   0x1   :  { %s263_s17 = scalar_lea.hbm %s451_s0, 16 }
   0x2   :  { %p264_p0 = scmp.ne.s32.totalorder %s451_s0, %s263_s17  ;;  %p267_p1 = scmp.lt.u32.totalorder %s263_s17, %s451_s0 }
   0x4   :  { %p269_p2 = pnand %p267_p1, %p264_p0 }
   0x6   :  { %272 = shalt.err (!%p269_p2)  }
   0x7   :  { %s355_s22 = smov [#allocation4]  }
   0x8   :  { %10 = dma.hbm_to_smem %s451_s0, 16, %s355_s22, [#allocation3] }
   0x9   :  { %343 = dma.done.wait [#allocation3], 16 }
   0xa   :  { %344 = vsyncadd [#allocation3], 4294967280 }
   0xb   :  { %12 = sfence }
   0xc   :  { %13 = vsyncpa [#allocation6], 0 }
   0xd   :  { %14 = vsyncpa [#allocation9], 0 }
   0xe   :  { %15 = vsyncpa [#allocation7], 0  ;;  %s356_s25 = smov [#allocation5]   ;;  %s273_s29 = scalar_lea.hbm %s452_s1, 512 }
   0xf   :  { %s21_s26 = sshll.u32 %s356_s25, 4  ;;  %p274_p3 = scmp.ne.s32.totalorder %s452_s1, %s273_s29  ;;  %s22_s26 = int_to_ptr.vmem [resolvable:$true] %s21_s26 }
  0x10   :  { %p277_p4 = scmp.lt.u32.totalorder %s273_s29, %s452_s1 }
  0x12   :  { %p279_p5 = pnand %p277_p4, %p274_p3 }
  0x14   :  { %282 = shalt.err (!%p279_p5)
}
  0x15   :  { %s283_s0 = scalar_lea.vmem %s22_s26, 512  ;;  %p288_p7 = scmp.lt.s32.totalorder %s22_s26, %s22_s26 }
  0x16   :  { %p284_p6 = scmp.ne.s32.totalorder %s22_s26, %s283_s0  ;;  %p289_p8 = scmp.lt.s32.totalorder %s283_s0, %s283_s0 }
  0x18   :  { %p290_p9 = por %p289_p8, %p288_p7 }
  0x1a   :  { %p291_p10 = pnand %p290_p9, %p284_p6 }
  0x1c   :  { %294 = shalt.err (!%p291_p10)
}
  0x1d   :  { %s357_s8 = smov 128   ;;  %s358_s9 = smov 8  }
  0x1e   :  { %27 = dma.hbm_to_vmem [thread:$0]  %s452_s1, 512, %s22_s26, [#allocation6], %s357_s8, %s357_s8, %s358_s9  }
  0x1f   :  { %s359_s12 = smov [#allocation8]   ;;  %s295_s16 = scalar_lea.hbm %s453_s2, 512 }
  0x20   :  { %s33_s13 = sshll.u32 %s359_s12, 4  ;;  %p296_p11 = scmp.ne.s32.totalorder %s453_s2, %s295_s16  ;;  %s34_s13 = int_to_ptr.vmem [resolvable:$true] %s33_s13 }
  0x21   :  { %p299_p12 = scmp.lt.u32.totalorder %s295_s16, %s453_s2 }
  0x23   :  { %p301_p13 = pnand %p299_p12, %p296_p11 }
  0x25   :  { %304 = shalt.err (!%p301_p13)
}
  0x26   :  { %s305_s21 = scalar_lea.vmem %s34_s13, 512  ;;  %p310_p1 = scmp.lt.s32.totalorder %s34_s13, %s34_s13 }
  0x27   :  { %p306_p0 = scmp.ne.s32.totalorder %s34_s13, %s305_s21  ;;  %p311_p2 = scmp.lt.s32.totalorder %s305_s21, %s305_s21 }
  0x29   :  { %p312_p3 = por %p311_p2, %p310_p1 }
  0x2b   :  { %p313_p4 = pnand %p312_p3, %p306_p0 }
  0x2d   :  { %316 = shalt.err (!%p313_p4)
}
  0x2e   :  { %39 = dma.hbm_to_vmem [thread:$0]  %s453_s2, 512, %s34_s13, [#allocation9], %s357_s8, %s357_s8, %s358_s9  }
  0x2f   :  { %345 = dma.done.wait [#allocation6], 512  }
  0x30   :  { %346 = vsyncadd [#allocation6], 4294966784 }
  0x31   :  { %347 = dma.done.wait [#allocation9], 512  }
  0x32   :  { %348 = vsyncadd [#allocation9], 4294966784  ;;  %s426_s23 = smov 0  }
  0x33 LB: > { %s219_s24 = sshll.u32 %s353_s23, 3  ;;  %vm100_vm0 = vcmask 253952   ;;  %v360_v15 = vmov 0.0   ;;  %s99_s20 = scalar_lea.vmem [#allocation2], %s353_s23  ;;  %s353_s23 = sphi %s426_s23, %s54_s23  }
  0x34   : > { %s57_s25 = sld [smem:[#allocation4 + %s219_s24]]  ;;  %s61_s26 = sadd.s32 1, %s219_s24 }
  0x35   : > { %s62_s27 = sld [smem:[#allocation4 + %s61_s26]]  ;;  %s66_s28 = sadd.s32 2, %s219_s24 }
  0x36   : > { %s67_s29 = sld [smem:[#allocation4 + %s66_s28]]  ;;  %s71_s30 = sadd.s32 3, %s219_s24 }
  0x37   : > { %s72_s2 = sld [smem:[#allocation4 + %s71_s30]]  ;;  %s76_s5 = sadd.s32 4, %s219_s24 }
  0x38   : > { %s77_s6 = sld [smem:[#allocation4 + %s76_s5]]  ;;  %s81_s7 = sadd.s32 5, %s219_s24 }
  0x39   : > { %s82_s0 = sld [smem:[#allocation4 + %s81_s7]]  ;;  %s86_s8 = sadd.s32 6, %s219_s24 }
  0x3a   : > { %s87_s9 = sld [smem:[#allocation4 + %s86_s8]]  ;;  %s58_s10 = scalar_lea.vmem [#allocation5], %s57_s25 }
  0x3b   : > { %v59_v0 = vld [vmem:[%s58_s10] sm:$0x1]  ;;  %s91_s11 = sadd.s32 7, %s219_s24  ;;  %s63_s12 = scalar_lea.vmem [#allocation5], %s62_s27 }
  0x3c   : > { %v64_v1 = vld [vmem:[%s63_s12] sm:$0x1]  ;;  %s92_s13 = sld [smem:[#allocation4 + %s91_s11]]  ;;  %s68_s14 = scalar_lea.vmem [#allocation5], %s67_s29 }
  0x3d   : > { %v65_v2 = vadd.f32 %v64_v1, %v59_v0  ;;  %v69_v3 = vld [vmem:[%s68_s14] sm:$0x1]  ;;  %s73_s15 = scalar_lea.vmem [#allocation5], %s72_s2  ;;  %s54_s23 = sadd.s32 1, %s353_s23  }
  0x3e   : > { %v74_v4 = vld [vmem:[%s73_s15] sm:$0x1]  ;;  %s78_s16 = scalar_lea.vmem [#allocation5], %s77_s6  ;;  %p51_p5 = scmp.ge.s32.totalorder %s54_s23, 8  }
  0x3f   : > { %v70_v5 = vadd.f32 %v69_v3, %v65_v2  ;;  %v79_v6 = vld [vmem:[%s78_s16] sm:$0x1]  ;;  %s83_s17 = scalar_lea.vmem [#allocation5], %s82_s0  ;;  %v103_v17 = vld [vmem:[#allocation8] sm:$0xff] (%p51_p5)  ;;  %v104_v18 = vld [vmem:[#allocation8 + $0x8] sm:$0xff] (%p51_p5)  ;;  %v361_v20 = vmov (%p51_p5), 0.0|0.0  }
  0x40   : > { %v84_v8 = vld [vmem:[%s83_s17] sm:$0x1]  ;;  %s88_s18 = scalar_lea.vmem [#allocation5], %s87_s9  ;;  %v105_v19 = vld [vmem:[#allocation8 + $0x10] sm:$0xff] (%p51_p5)  ;;  %239 = vmatprep.subr.bf16.mxu0 (%p51_p5), %v361_v20  ;;  %v240_v21 = vpack.c.bf16 (%p51_p5), %v104_v18, %v103_v17  ;;  %vm362_vm2 = vmmov (%p51_p5), 0   ;;  %v363_v23 = vmov (%p51_p5), 0.0  }
  0x41   : > { %v75_v7 = vadd.f32 %v74_v4, %v70_v5  ;;  %v89_v10 = vld [vmem:[%s88_s18] sm:$0x1]  ;;  %236 = vmatprep.mubr.msk.f32.mxu0 (%p51_p5), %vm362_vm2, %v363_v23  ;;  %vm114_vm3 = vcmask (%p51_p5), 261120   ;;  %s364_s22 = smov (%p51_p5), [#allocation10]  }
  0x42   : > { %s93_s19 = scalar_lea.vmem [#allocation5], %s92_s13  ;;  %v106_v22 = vld [vmem:[#allocation8 + $0x18] sm:$0xff] (%p51_p5)  ;;  %241 = vmatpush3.bf16.msra.mxu0 (%p51_p5), %v240_v21  ;;  %s195_s23 = sshll.u32 (%p51_p5), %s364_s22, 4  ;;  %s196_s23 = int_to_ptr.vmem [resolvable:$true] %s195_s23 }
  0x43   : > { %v80_v9 = vadd.f32 %v79_v6, %v75_v7  ;;  %v94_v12 = vld [vmem:[%s93_s19] sm:$0x1]  ;;  %v243_v24 = vpack.c.bf16 (%p51_p5), %v106_v22, %v105_v19  ;;  %242 = vmatprep.subr.bf16.mxu0 (%p51_p5), %v361_v20  ;;  %s317_s24 = scalar_lea.vmem (%p51_p5), %s196_s23, 128  ;;  %p322_p7 = scmp.lt.s32.totalorder (%p51_p5), %s196_s23, %s196_s23 }
  0x44   :  { %v221_v26 = vld [vmem:[%s454_s3] ss:$0 sm:$0xff] (%p51_p5)  ;;  %p318_p6 = scmp.ne.s32.totalorder (%p51_p5), %s196_s23, %s317_s24  ;;  %p323_p8 = scmp.lt.s32.totalorder (%p51_p5), %s317_s24, %s317_s24 }
  0x45   : > { %v85_v11 = vadd.f32 %v84_v8, %v80_v9 }
  0x46   :  { %244 = vmatpush3.bf16.msra.mxu0 (%p51_p5), %v243_v24  ;;  %p324_p9 = por (%p51_p5), %p323_p8, %p322_p7 }
  0x47   : > { %v90_v13 = vadd.f32 %v89_v10, %v85_v11  ;;  %53 = sbr.rel (!%p51_p5) target bundleno = 51 (0x33), region = 56 }
  0x48   :  { %p325_p10 = pnand (%p51_p5), %p324_p9, %p318_p6 }
  0x49   : > { %v95_v14 = vadd.f32 %v94_v12, %v90_v13 }
  0x4b   : > { %vm96_vm1 = vcmp.gt.f32.partialorder %v95_v14, 0.0 }
  0x4c   : > { %v220_v16 = vsel %vm96_vm1, 1.0, %v360_v15 }
  0x4d   : > { %101 = vst.msk [vmem:[%s99_s20] sm:$0x1] %vm100_vm0, %v220_v16 }
  0x54   :  { %v102_v25 = vld [vmem:[#allocation2] sm:$0xff] }
  0x55   :  { %237 = vmatmul.mubr.msk.f32.vlgmr.msra.gmra.mrb[0].mxu0 %vm114_vm3, %v102_v25 }
 0x128   :  { %v184_v27 = vpop.f32.mrb[0].mxu0 }
 0x129   :  { %v185_v28 = vadd.f32 %v221_v26, %v184_v27  ;;  %v238_v29 = vpop.f32.mrb[1].mxu0 }
 0x12b   :  { %188 = vst [vmem:[#allocation10] sm:$0xff] %v185_v28 }
 0x12c   :  { %328 = shalt.err (!%p325_p10)
}
 0x12d   :  { %s329_s27 = scalar_lea.hbm %s455_s4, 128 }
 0x12e   :  { %p330_p11 = scmp.ne.s32.totalorder %s455_s4, %s329_s27  ;;  %p333_p12 = scmp.lt.u32.totalorder %s329_s27, %s455_s4 }
 0x130   :  { %p335_p13 = pnand %p333_p12, %p330_p11 }
 0x132   :  { %338 = shalt.err (!%p335_p13)
}
 0x133   :  { %198 = dma.vmem_to_hbm [thread:$0]  %s196_s23, 128, %s455_s4, [#allocation7]  }
 0x134   :  { %349 = dma.done.wait [#allocation7], 128  }
 0x135   :  { %350 = vsyncadd [#allocation7], 4294967168 }
 0x136   :  { %202 = vsyncpa [#allocation6], 1 }
 0x137   :  { %203 = vsyncpa [#allocation9], 1 }
 0x138   :  { %204 = vsyncpa [#allocation7], 1 }

</bundles_post_ra>
